<compile_context>
chip_gen: v5e
topology: v5e:2x2
jax: 0.10.0
libtpu: 0.0.40
codegen_flags: <defaults>
</compile_context>

<pallas_src>
import jax
import jax.numpy as jnp
from jax.experimental import pallas as pl
from jax.experimental.pallas import tpu as pltpu


def _gru_gates(xg, hg, h, H):
    """xg, hg: (TB, 3H) fused pre-activations [r | z | n]; h: (TB, H)."""
    # One sigmoid wave over 2H lanes for r and z (single EUP launch), one tanh for n.
    rz = jax.nn.sigmoid(xg[:, :2 * H] + hg[:, :2 * H])
    r = rz[:, :H]
    z = rz[:, H:]
    n = jnp.tanh(xg[:, 2 * H:] + r * hg[:, 2 * H:])
    return (1.0 - z) * n + z * h


def news_agg_kernel(len_ref, x_ref,
                    wih0_ref, whh0_ref, bih0_ref, bhh0_ref,
                    wih1_ref, whh1_ref, bih1_ref, bhh1_ref,
                    wa1_ref, ba1_ref, wa2_ref, ba2_ref,
                    out_ref, attn_ref,
                    xproj_ref, seq1_ref):
    T, TB, D = x_ref.shape
    H = whh0_ref.shape[0]
    f32 = jnp.float32
    bf16 = jnp.bfloat16

    # ---- hoisted layer-0 input projection: ONE (T*TB, D)x(D, 3H) MXU matmul ----
    x2d = x_ref[...].reshape(T * TB, D).astype(bf16)
    xp = jnp.dot(x2d, wih0_ref[...], preferred_element_type=f32) + bih0_ref[...]
    xproj_ref[...] = xp.reshape(T, TB, 3 * H)

    whh0 = whh0_ref[...]
    bhh0 = bhh0_ref[...]
    wih1 = wih1_ref[...]
    bih1 = bih1_ref[...]
    whh1 = whh1_ref[...]
    bhh1 = bhh1_ref[...]

    # ---- fused 2-layer recurrence (layer-0 then layer-1 per step) ----
    def step(t, carry):
        h0, h1 = carry
        # layer 0: one fused (TB,H)x(H,3H) matmul for the hidden projection
        hg0 = jnp.dot(h0.astype(bf16), whh0, preferred_element_type=f32) + bhh0
        h0n = _gru_gates(xproj_ref[t], hg0, h0, H)
        # layer 1 (no inter-layer dropout: inference semantics)
        xg1 = jnp.dot(h0n.astype(bf16), wih1, preferred_element_type=f32) + bih1
        hg1 = jnp.dot(h1.astype(bf16), whh1, preferred_element_type=f32) + bhh1
        h1n = _gru_gates(xg1, hg1, h1, H)
        seq1_ref[t] = h1n
        return (h0n, h1n)

    h_init = jnp.zeros((TB, H), f32)
    jax.lax.fori_loop(0, T, step, (h_init, h_init))

    # ---- attention scores, batched over all (t, b): one matmul + one lane reduce ----
    seq2d = seq1_ref[...].reshape(T * TB, H)
    e = jnp.tanh(jnp.dot(seq2d.astype(bf16), wa1_ref[...],
                         preferred_element_type=f32) + ba1_ref[...])          # (T*TB, A)
    s = jnp.sum(e * wa2_ref[...], axis=-1, keepdims=True) + ba2_ref[...]      # (T*TB, 1)
    s3 = s.reshape(T, TB, 1)                                                  # time-major

    # mask padded timesteps (t >= length), softmax over time (major axis -> cheap reduce)
    tidx = jax.lax.broadcasted_iota(jnp.int32, (T, TB, 1), 0)
    mask = tidx < len_ref[...]                                                # (TB,1) bcast
    s3 = jnp.where(mask, s3, f32(-1e10))
    m = jnp.max(s3, axis=0, keepdims=True)
    p = jnp.exp(s3 - m)
    attn = p / jnp.sum(p, axis=0, keepdims=True)                              # (T, TB, 1)
    attn_ref[...] = attn

    # ---- weighted output: fori_loop re-reading seq1 scratch (bounded live ranges) ----
    def wsum(t, acc):
        return acc + attn_ref[t] * seq1_ref[t]

    out_ref[...] = jax.lax.fori_loop(0, T, wsum, jnp.zeros((TB, H), f32))


def news_aggregator_forward(params, x, lengths, *, batch_tile=8):
    """x: (B, T, D) float32 batch_first; lengths: (B,) int.
    Returns weighted_output (B, H) and attention_weights (B, T)."""
    B, T, D = x.shape
    H = params["whh0"].shape[0]

    # Pad batch to a multiple of the batch tile (sublane / grid friendly).
    B_pad = ((B + batch_tile - 1) // batch_tile) * batch_tile
    pad_b = B_pad - B
    x_p = jnp.pad(x.astype(jnp.float32), ((0, pad_b), (0, 0), (0, 0)))
    len_p = jnp.pad(lengths.astype(jnp.int32), (0, pad_b), constant_values=1)

    x_tbd = jnp.transpose(x_p, (1, 0, 2))            # time-major (T, B_pad, D)
    len_col = len_p.reshape(B_pad, 1)

    TB = batch_tile
    grid = (B_pad // TB,)

    def bf(name):
        return params[name].astype(jnp.bfloat16)     # matmul weights -> bf16, f32 accumulate

    weights = (bf("wih0"), bf("whh0"), params["bih0"], params["bhh0"],
               bf("wih1"), bf("whh1"), params["bih1"], params["bhh1"],
               bf("wa1"), params["ba1"], params["wa2"], params["ba2"])

    def const_spec(arr):
        nd = arr.ndim
        return pl.BlockSpec(arr.shape, lambda i, _nd=nd: (0,) * _nd)

    in_specs = ([pl.BlockSpec((TB, 1), lambda i: (i, 0)),         # lengths
                 pl.BlockSpec((T, TB, D), lambda i: (0, i, 0))]   # x (time-major)
                + [const_spec(w) for w in weights])
    out_specs = (pl.BlockSpec((TB, H), lambda i: (i, 0)),         # weighted output
                 pl.BlockSpec((T, TB, 1), lambda i: (0, i, 0)))   # attn, time-major

    fn = pl.pallas_call(
        news_agg_kernel,
        grid=grid,
        out_shape=(jax.ShapeDtypeStruct((B_pad, H), jnp.float32),
                   jax.ShapeDtypeStruct((T, B_pad, 1), jnp.float32)),
        in_specs=in_specs,
        out_specs=out_specs,
        scratch_shapes=[pltpu.VMEM((T, TB, 3 * H), jnp.float32),  # hoisted input projection
                        pltpu.VMEM((T, TB, H), jnp.float32)],     # layer-1 outputs
        compiler_params=pltpu.CompilerParams(
            dimension_semantics=("parallel",),
            vmem_limit_bytes=32 * 1024 * 1024),
    )
    weighted, attn_t = fn(len_col, x_tbd, *weights)
    weighted = weighted[:B]
    attn = jnp.transpose(attn_t[:, :B, 0])           # back to batch_first (B, T)
    return weighted, attn


# ---------------- pure-JAX reference (same math/precision, for validation) ----------------

def reference_forward(params, x, lengths):
    B, T, _ = x.shape
    H = params["whh0"].shape[0]
    f32 = jnp.float32
    bf16 = jnp.bfloat16

    def bdot(a, w):
        return jnp.dot(a.astype(bf16), w.astype(bf16), preferred_element_type=f32)

    def gru_layer(seq, wih, whh, bih, bhh):
        xg_all = (bdot(seq.reshape(B * T, -1), wih).reshape(B, T, 3 * H) + bih)
        h = jnp.zeros((B, H), f32)
        outs = []
        for t in range(T):
            xg = xg_all[:, t, :]
            hg = bdot(h, whh) + bhh
            rz = jax.nn.sigmoid(xg[:, :2 * H] + hg[:, :2 * H])
            r, z = rz[:, :H], rz[:, H:]
            n = jnp.tanh(xg[:, 2 * H:] + r * hg[:, 2 * H:])
            h = (1.0 - z) * n + z * h
            outs.append(h)
        return jnp.stack(outs, axis=1)                            # (B, T, H)

    o1 = gru_layer(x.astype(f32), params["wih0"], params["whh0"],
                   params["bih0"], params["bhh0"])
    o2 = gru_layer(o1, params["wih1"], params["whh1"],
                   params["bih1"], params["bhh1"])

    e = jnp.tanh(bdot(o2.reshape(B * T, H), params["wa1"]) + params["ba1"])
    scores = (jnp.sum(e * params["wa2"], axis=-1, keepdims=True)
              + params["ba2"]).reshape(B, T)
    mask = jnp.arange(T)[None, :] < lengths[:, None]
    scores = jnp.where(mask, scores, f32(-1e10))
    attn = jax.nn.softmax(scores, axis=1)
    weighted = jnp.sum(attn[:, :, None] * o2, axis=1)
    return weighted, attn


def make_params(key, input_size, hidden_size, attn_hidden=64):
    ks = jax.random.split(key, 12)
    kg = 1.0 / (hidden_size ** 0.5)
    ka1 = 1.0 / (hidden_size ** 0.5)
    ka2 = 1.0 / (attn_hidden ** 0.5)

    def u(k, shape, bound):
        return jax.random.uniform(k, shape, jnp.float32, -bound, bound)

    H3 = 3 * hidden_size
    return {
        # Fused GRU weights, PyTorch gate order [r | z | n] on the last axis,
        # stored pre-transposed as (in_features, 3H); fused biases (1, 3H).
        "wih0": u(ks[0], (input_size, H3), kg),
        "whh0": u(ks[1], (hidden_size, H3), kg),
        "bih0": u(ks[2], (1, H3), kg),
        "bhh0": u(ks[3], (1, H3), kg),
        "wih1": u(ks[4], (hidden_size, H3), kg),
        "whh1": u(ks[5], (hidden_size, H3), kg),
        "bih1": u(ks[6], (1, H3), kg),
        "bhh1": u(ks[7], (1, H3), kg),
        # attention: Linear(H, 64) -> Tanh -> Linear(64, 1)
        "wa1": u(ks[8], (hidden_size, attn_hidden), ka1),
        "ba1": u(ks[9], (1, attn_hidden), ka1),
        "wa2": u(ks[10], (1, attn_hidden), ka2),
        "ba2": u(ks[11], (1, 1), ka2),
    }


if __name__ == "__main__":
    B, T, D, H = 4, 8, 8, 32   # small shapes: batch=4, seq=8, input_size=8, hidden=32

    key = jax.random.PRNGKey(0)
    k_params, k_x = jax.random.split(key)
    params = make_params(k_params, D, H)

    x = jax.random.normal(k_x, (B, T, D), jnp.float32)
    lengths = jnp.array([8, 5, 3, 8], dtype=jnp.int32)   # max(lengths) == T

    weighted, attn = news_aggregator_forward(params, x, lengths)
    jax.block_until_ready((weighted, attn))

    ref_w, ref_a = reference_forward(params, x, lengths)

    assert weighted.shape == (B, H) and attn.shape == (B, T)
    assert bool(jnp.allclose(jnp.sum(attn, axis=1), 1.0, atol=1e-3))
    # bf16 matmul inputs / f32 accumulation in both kernel and reference -> modest tolerance.
    assert bool(jnp.allclose(attn, ref_a, rtol=1e-2, atol=1e-2))
    assert bool(jnp.allclose(weighted, ref_w, rtol=1e-2, atol=1e-2))

    print("KERNEL_OK")
</pallas_src>

<mosaic_0001>
module attributes {stable_mosaic.version = 11 : i64} {
  func.func @news_agg_kernel(%arg0: i32, %arg1: memref<8x1xi32, #tpu.memory_space<vmem>>, %arg2: memref<8x8x8xf32, #tpu.memory_space<vmem>>, %arg3: memref<8x96xbf16, #tpu.memory_space<vmem>>, %arg4: memref<32x96xbf16, #tpu.memory_space<vmem>>, %arg5: memref<1x96xf32, #tpu.memory_space<vmem>>, %arg6: memref<1x96xf32, #tpu.memory_space<vmem>>, %arg7: memref<32x96xbf16, #tpu.memory_space<vmem>>, %arg8: memref<32x96xbf16, #tpu.memory_space<vmem>>, %arg9: memref<1x96xf32, #tpu.memory_space<vmem>>, %arg10: memref<1x96xf32, #tpu.memory_space<vmem>>, %arg11: memref<32x64xbf16, #tpu.memory_space<vmem>>, %arg12: memref<1x64xf32, #tpu.memory_space<vmem>>, %arg13: memref<1x64xf32, #tpu.memory_space<vmem>>, %arg14: memref<1x1xf32, #tpu.memory_space<vmem>>, %arg15: memref<8x32xf32, #tpu.memory_space<vmem>>, %arg16: memref<8x8x1xf32, #tpu.memory_space<vmem>>, %arg17: memref<8x8x96xf32, #tpu.memory_space<vmem>>, %arg18: memref<8x8x32xf32, #tpu.memory_space<vmem>>) attributes {dimension_semantics = [#tpu.dimension_semantics<parallel>], iteration_bounds = array<i64: 1>, scalar_prefetch = 0 : i64, scratch_operands = 2 : i64, tpu.core_type = #tpu.core_type<tc>, window_params = [{transform_indices = @transform_0, window_bounds = array<i64: 8, 1>}, {transform_indices = @transform_1, window_bounds = array<i64: 8, 8, 8>}, {pipeline_mode = #tpu.pipeline_mode<synchronous>, transform_indices = @transform_2, window_bounds = array<i64: 8, 96>}, {pipeline_mode = #tpu.pipeline_mode<synchronous>, transform_indices = @transform_3, window_bounds = array<i64: 32, 96>}, {pipeline_mode = #tpu.pipeline_mode<synchronous>, transform_indices = @transform_4, window_bounds = array<i64: 1, 96>}, {pipeline_mode = #tpu.pipeline_mode<synchronous>, transform_indices = @transform_5, window_bounds = array<i64: 1, 96>}, {pipeline_mode = #tpu.pipeline_mode<synchronous>, transform_indices = @transform_6, window_bounds = array<i64: 32, 96>}, {pipeline_mode = #tpu.pipeline_mode<synchronous>, transform_indices = @transform_7, window_bounds = array<i64: 32, 96>}, {pipeline_mode = #tpu.pipeline_mode<synchronous>, transform_indices = @transform_8, window_bounds = array<i64: 1, 96>}, {pipeline_mode = #tpu.pipeline_mode<synchronous>, transform_indices = @transform_9, window_bounds = array<i64: 1, 96>}, {pipeline_mode = #tpu.pipeline_mode<synchronous>, transform_indices = @transform_10, window_bounds = array<i64: 32, 64>}, {pipeline_mode = #tpu.pipeline_mode<synchronous>, transform_indices = @transform_11, window_bounds = array<i64: 1, 64>}, {pipeline_mode = #tpu.pipeline_mode<synchronous>, transform_indices = @transform_12, window_bounds = array<i64: 1, 64>}, {pipeline_mode = #tpu.pipeline_mode<synchronous>, transform_indices = @transform_13, window_bounds = array<i64: 1, 1>}, {transform_indices = @transform_14, window_bounds = array<i64: 8, 32>}, {transform_indices = @transform_15, window_bounds = array<i64: 8, 8, 1>}]} {
    %c0 = arith.constant 0 : index
    %c0_0 = arith.constant 0 : index
    %c0_1 = arith.constant 0 : index
    %0 = vector.load %arg2[%c0, %c0_0, %c0_1] : memref<8x8x8xf32, #tpu.memory_space<vmem>>, vector<8x8x8xf32>
    %1 = vector.shape_cast %0 : vector<8x8x8xf32> to vector<64x8xf32>
    %2 = arith.truncf %1 : vector<64x8xf32> to vector<64x8xbf16>
    %c0_2 = arith.constant 0 : index
    %c0_3 = arith.constant 0 : index
    %3 = vector.load %arg3[%c0_2, %c0_3] : memref<8x96xbf16, #tpu.memory_space<vmem>>, vector<8x96xbf16>
    %cst = arith.constant dense<0.000000e+00> : vector<64x96xf32>
    %4 = tpu.matmul %2, %3, %cst {dimension_numbers = #tpu.dot_dimension_numbers<[1], [0], [0], [1], [0, 0, 1, 1], [], []>} : vector<64x8xbf16>, vector<8x96xbf16>, vector<64x96xf32> -> vector<64x96xf32>
    %c0_4 = arith.constant 0 : index
    %c0_5 = arith.constant 0 : index
    %5 = vector.load %arg5[%c0_4, %c0_5] : memref<1x96xf32, #tpu.memory_space<vmem>>, vector<1x96xf32>
    %6 = vector.broadcast %5 : vector<1x96xf32> to vector<64x96xf32>
    %7 = arith.addf %4, %6 : vector<64x96xf32>
    %8 = vector.shape_cast %7 : vector<64x96xf32> to vector<8x8x96xf32>
    %c0_6 = arith.constant 0 : index
    %c0_7 = arith.constant 0 : index
    %c0_8 = arith.constant 0 : index
    %9 = vector.load %arg17[%c0_6, %c0_7, %c0_8] : memref<8x8x96xf32, #tpu.memory_space<vmem>>, vector<8x8x96xf32>
    tpu.vector_store %arg17[%c0_6, %c0_7, %c0_8], %8 {strides = array<i32>} : memref<8x8x96xf32, #tpu.memory_space<vmem>>, vector<8x8x96xf32>,
    %c0_9 = arith.constant 0 : index
    %c0_10 = arith.constant 0 : index
    %10 = vector.load %arg4[%c0_9, %c0_10] : memref<32x96xbf16, #tpu.memory_space<vmem>>, vector<32x96xbf16>
    %c0_11 = arith.constant 0 : index
    %c0_12 = arith.constant 0 : index
    %11 = vector.load %arg6[%c0_11, %c0_12] : memref<1x96xf32, #tpu.memory_space<vmem>>, vector<1x96xf32>
    %c0_13 = arith.constant 0 : index
    %c0_14 = arith.constant 0 : index
    %12 = vector.load %arg7[%c0_13, %c0_14] : memref<32x96xbf16, #tpu.memory_space<vmem>>, vector<32x96xbf16>
    %c0_15 = arith.constant 0 : index
    %c0_16 = arith.constant 0 : index
    %13 = vector.load %arg9[%c0_15, %c0_16] : memref<1x96xf32, #tpu.memory_space<vmem>>, vector<1x96xf32>
    %c0_17 = arith.constant 0 : index
    %c0_18 = arith.constant 0 : index
    %14 = vector.load %arg8[%c0_17, %c0_18] : memref<32x96xbf16, #tpu.memory_space<vmem>>, vector<32x96xbf16>
    %c0_19 = arith.constant 0 : index
    %c0_20 = arith.constant 0 : index
    %15 = vector.load %arg10[%c0_19, %c0_20] : memref<1x96xf32, #tpu.memory_space<vmem>>, vector<1x96xf32>
    %cst_21 = arith.constant 0.000000e+00 : f32
    %16 = vector.broadcast %cst_21 : f32 to vector<8x32xf32>
    %c0_i32 = arith.constant 0 : i32
    %c8_i32 = arith.constant 8 : i32
    %17 = arith.addi %c0_i32, %c8_i32 : i32
    %c1_i32 = arith.constant 1 : i32
    %18:2 = scf.for %arg19 = %c0_i32 to %17 step %c1_i32 iter_args(%arg20 = %16, %arg21 = %16) -> (vector<8x32xf32>, vector<8x32xf32>)  : i32 {
      %58 = arith.truncf %arg20 : vector<8x32xf32> to vector<8x32xbf16>
      %cst_51 = arith.constant dense<0.000000e+00> : vector<8x96xf32>
      %59 = tpu.matmul %58, %10, %cst_51 {dimension_numbers = #tpu.dot_dimension_numbers<[1], [0], [0], [1], [0, 0, 1, 1], [], []>} : vector<8x32xbf16>, vector<32x96xbf16>, vector<8x96xf32> -> vector<8x96xf32>
      %60 = vector.broadcast %11 : vector<1x96xf32> to vector<8x96xf32>
      %61 = arith.addf %59, %60 : vector<8x96xf32>
      %62 = arith.index_cast %arg19 : i32 to index
      %c0_52 = arith.constant 0 : index
      %c0_53 = arith.constant 0 : index
      %63 = vector.load %arg17[%62, %c0_52, %c0_53] : memref<8x8x96xf32, #tpu.memory_space<vmem>>, vector<1x8x96xf32>
      %64 = vector.shape_cast %63 : vector<1x8x96xf32> to vector<8x96xf32>
      %65 = vector.extract_strided_slice %64 {offsets = [0, 0], sizes = [8, 64], strides = [1, 1]} : vector<8x96xf32> to vector<8x64xf32>
      %66 = vector.extract_strided_slice %61 {offsets = [0, 0], sizes = [8, 64], strides = [1, 1]} : vector<8x96xf32> to vector<8x64xf32>
      %67 = arith.addf %65, %66 : vector<8x64xf32>
      %68 = arith.negf %67 : vector<8x64xf32>
      %69 = math.exp %68 : vector<8x64xf32>
      %cst_54 = arith.constant 1.000000e+00 : f32
      %70 = vector.broadcast %cst_54 : f32 to vector<8x64xf32>
      %71 = arith.addf %70, %69 : vector<8x64xf32>
      %72 = arith.divf %70, %71 : vector<8x64xf32>
      %73 = vector.extract_strided_slice %72 {offsets = [0, 0], sizes = [8, 32], strides = [1, 1]} : vector<8x64xf32> to vector<8x32xf32>
      %74 = vector.extract_strided_slice %72 {offsets = [0, 32], sizes = [8, 32], strides = [1, 1]} : vector<8x64xf32> to vector<8x32xf32>
      %75 = vector.extract_strided_slice %64 {offsets = [0, 64], sizes = [8, 32], strides = [1, 1]} : vector<8x96xf32> to vector<8x32xf32>
      %76 = vector.extract_strided_slice %61 {offsets = [0, 64], sizes = [8, 32], strides = [1, 1]} : vector<8x96xf32> to vector<8x32xf32>
      %77 = arith.mulf %73, %76 : vector<8x32xf32>
      %78 = arith.addf %75, %77 : vector<8x32xf32>
      %79 = math.tanh %78 : vector<8x32xf32>
      %cst_55 = arith.constant 1.000000e+00 : f32
      %80 = vector.broadcast %cst_55 : f32 to vector<8x32xf32>
      %81 = arith.subf %80, %74 : vector<8x32xf32>
      %82 = arith.mulf %81, %79 : vector<8x32xf32>
      %83 = arith.mulf %74, %arg20 : vector<8x32xf32>
      %84 = arith.addf %82, %83 : vector<8x32xf32>
      %85 = arith.truncf %84 : vector<8x32xf32> to vector<8x32xbf16>
      %cst_56 = arith.constant dense<0.000000e+00> : vector<8x96xf32>
      %86 = tpu.matmul %85, %12, %cst_56 {dimension_numbers = #tpu.dot_dimension_numbers<[1], [0], [0], [1], [0, 0, 1, 1], [], []>} : vector<8x32xbf16>, vector<32x96xbf16>, vector<8x96xf32> -> vector<8x96xf32>
      %87 = vector.broadcast %13 : vector<1x96xf32> to vector<8x96xf32>
      %88 = arith.addf %86, %87 : vector<8x96xf32>
      %89 = arith.truncf %arg21 : vector<8x32xf32> to vector<8x32xbf16>
      %cst_57 = arith.constant dense<0.000000e+00> : vector<8x96xf32>
      %90 = tpu.matmul %89, %14, %cst_57 {dimension_numbers = #tpu.dot_dimension_numbers<[1], [0], [0], [1], [0, 0, 1, 1], [], []>} : vector<8x32xbf16>, vector<32x96xbf16>, vector<8x96xf32> -> vector<8x96xf32>
      %91 = vector.broadcast %15 : vector<1x96xf32> to vector<8x96xf32>
      %92 = arith.addf %90, %91 : vector<8x96xf32>
      %93 = vector.extract_strided_slice %88 {offsets = [0, 0], sizes = [8, 64], strides = [1, 1]} : vector<8x96xf32> to vector<8x64xf32>
      %94 = vector.extract_strided_slice %92 {offsets = [0, 0], sizes = [8, 64], strides = [1, 1]} : vector<8x96xf32> to vector<8x64xf32>
      %95 = arith.addf %93, %94 : vector<8x64xf32>
      %96 = arith.negf %95 : vector<8x64xf32>
      %97 = math.exp %96 : vector<8x64xf32>
      %cst_58 = arith.constant 1.000000e+00 : f32
      %98 = vector.broadcast %cst_58 : f32 to vector<8x64xf32>
      %99 = arith.addf %98, %97 : vector<8x64xf32>
      %100 = arith.divf %98, %99 : vector<8x64xf32>
      %101 = vector.extract_strided_slice %100 {offsets = [0, 0], sizes = [8, 32], strides = [1, 1]} : vector<8x64xf32> to vector<8x32xf32>
      %102 = vector.extract_strided_slice %100 {offsets = [0, 32], sizes = [8, 32], strides = [1, 1]} : vector<8x64xf32> to vector<8x32xf32>
      %103 = vector.extract_strided_slice %88 {offsets = [0, 64], sizes = [8, 32], strides = [1, 1]} : vector<8x96xf32> to vector<8x32xf32>
      %104 = vector.extract_strided_slice %92 {offsets = [0, 64], sizes = [8, 32], strides = [1, 1]} : vector<8x96xf32> to vector<8x32xf32>
      %105 = arith.mulf %101, %104 : vector<8x32xf32>
      %106 = arith.addf %103, %105 : vector<8x32xf32>
      %107 = math.tanh %106 : vector<8x32xf32>
      %cst_59 = arith.constant 1.000000e+00 : f32
      %108 = vector.broadcast %cst_59 : f32 to vector<8x32xf32>
      %109 = arith.subf %108, %102 : vector<8x32xf32>
      %110 = arith.mulf %109, %107 : vector<8x32xf32>
      %111 = arith.mulf %102, %arg21 : vector<8x32xf32>
      %112 = arith.addf %110, %111 : vector<8x32xf32>
      %113 = arith.index_cast %arg19 : i32 to index
      %c0_60 = arith.constant 0 : index
      %c0_61 = arith.constant 0 : index
      %114 = vector.load %arg18[%113, %c0_60, %c0_61] : memref<8x8x32xf32, #tpu.memory_space<vmem>>, vector<1x8x32xf32>
      %115 = vector.shape_cast %114 : vector<1x8x32xf32> to vector<8x32xf32>
      %116 = vector.shape_cast %112 : vector<8x32xf32> to vector<1x8x32xf32>
      tpu.vector_store %arg18[%113, %c0_60, %c0_61], %116 {strides = array<i32>} : memref<8x8x32xf32, #tpu.memory_space<vmem>>, vector<1x8x32xf32>,
      scf.yield %84, %112 : vector<8x32xf32>, vector<8x32xf32>
    }
    %c8_i32_22 = arith.constant 8 : i32
    %c0_23 = arith.constant 0 : index
    %c0_24 = arith.constant 0 : index
    %c0_25 = arith.constant 0 : index
    %19 = vector.load %arg18[%c0_23, %c0_24, %c0_25] : memref<8x8x32xf32, #tpu.memory_space<vmem>>, vector<8x8x32xf32>
    %20 = vector.shape_cast %19 : vector<8x8x32xf32> to vector<64x32xf32>
    %21 = arith.truncf %20 : vector<64x32xf32> to vector<64x32xbf16>
    %c0_26 = arith.constant 0 : index
    %c0_27 = arith.constant 0 : index
    %22 = vector.load %arg11[%c0_26, %c0_27] : memref<32x64xbf16, #tpu.memory_space<vmem>>, vector<32x64xbf16>
    %cst_28 = arith.constant dense<0.000000e+00> : vector<64x64xf32>
    %23 = tpu.matmul %21, %22, %cst_28 {dimension_numbers = #tpu.dot_dimension_numbers<[1], [0], [0], [1], [0, 0, 1, 1], [], []>} : vector<64x32xbf16>, vector<32x64xbf16>, vector<64x64xf32> -> vector<64x64xf32>
    %c0_29 = arith.constant 0 : index
    %c0_30 = arith.constant 0 : index
    %24 = vector.load %arg12[%c0_29, %c0_30] : memref<1x64xf32, #tpu.memory_space<vmem>>, vector<1x64xf32>
    %25 = vector.broadcast %24 : vector<1x64xf32> to vector<64x64xf32>
    %26 = arith.addf %23, %25 : vector<64x64xf32>
    %27 = math.tanh %26 : vector<64x64xf32>
    %c0_31 = arith.constant 0 : index
    %c0_32 = arith.constant 0 : index
    %28 = vector.load %arg13[%c0_31, %c0_32] : memref<1x64xf32, #tpu.memory_space<vmem>>, vector<1x64xf32>
    %29 = vector.broadcast %28 : vector<1x64xf32> to vector<64x64xf32>
    %30 = arith.mulf %27, %29 : vector<64x64xf32>
    %cst_33 = arith.constant dense<0.000000e+00> : vector<64xf32>
    %31 = vector.multi_reduction <add>, %30, %cst_33 [1] : vector<64x64xf32> to vector<64xf32>
    %32 = vector.shape_cast %31 : vector<64xf32> to vector<64x1xf32>
    %c0_34 = arith.constant 0 : index
    %c0_35 = arith.constant 0 : index
    %33 = vector.load %arg14[%c0_34, %c0_35] : memref<1x1xf32, #tpu.memory_space<vmem>>, vector<1x1xf32>
    %34 = vector.broadcast %33 : vector<1x1xf32> to vector<64x1xf32>
    %35 = arith.addf %32, %34 : vector<64x1xf32>
    %36 = vector.shape_cast %35 : vector<64x1xf32> to vector<8x8x1xf32>
    %37 = tpu.iota {dimensions = array<i32: 0>} : vector<8x8x1xi32>
    %c0_36 = arith.constant 0 : index
    %c0_37 = arith.constant 0 : index
    %38 = vector.load %arg1[%c0_36, %c0_37] : memref<8x1xi32, #tpu.memory_space<vmem>>, vector<8x1xi32>
    %39 = vector.shape_cast %38 : vector<8x1xi32> to vector<1x8x1xi32>
    %40 = vector.broadcast %39 : vector<1x8x1xi32> to vector<8x8x1xi32>
    %41 = arith.cmpi slt, %37, %40 : vector<8x8x1xi32>
    %cst_38 = arith.constant -1.000000e+10 : f32
    %42 = vector.broadcast %cst_38 : f32 to vector<8x8x1xf32>
    %43 = arith.select %41, %36, %42 : vector<8x8x1xi1>, vector<8x8x1xf32>
    %cst_39 = arith.constant dense<0xFF800000> : vector<8x1xf32>
    %44 = vector.multi_reduction <maximumf>, %43, %cst_39 [0] : vector<8x8x1xf32> to vector<8x1xf32>
    %45 = vector.shape_cast %44 : vector<8x1xf32> to vector<1x8x1xf32>
    %46 = vector.broadcast %45 : vector<1x8x1xf32> to vector<8x8x1xf32>
    %47 = arith.subf %43, %46 : vector<8x8x1xf32>
    %48 = math.exp %47 : vector<8x8x1xf32>
    %cst_40 = arith.constant dense<0.000000e+00> : vector<8x1xf32>
    %49 = vector.multi_reduction <add>, %48, %cst_40 [0] : vector<8x8x1xf32> to vector<8x1xf32>
    %50 = vector.shape_cast %49 : vector<8x1xf32> to vector<1x8x1xf32>
    %51 = vector.broadcast %50 : vector<1x8x1xf32> to vector<8x8x1xf32>
    %52 = arith.divf %48, %51 : vector<8x8x1xf32>
    %c0_41 = arith.constant 0 : index
    %c0_42 = arith.constant 0 : index
    %c0_43 = arith.constant 0 : index
    %53 = vector.load %arg16[%c0_41, %c0_42, %c0_43] : memref<8x8x1xf32, #tpu.memory_space<vmem>>, vector<8x8x1xf32>
    tpu.vector_store %arg16[%c0_41, %c0_42, %c0_43], %52 {strides = array<i32>} : memref<8x8x1xf32, #tpu.memory_space<vmem>>, vector<8x8x1xf32>,
    %cst_44 = arith.constant 0.000000e+00 : f32
    %54 = vector.broadcast %cst_44 : f32 to vector<8x32xf32>
    %c0_i32_45 = arith.constant 0 : i32
    %c8_i32_46 = arith.constant 8 : i32
    %55 = arith.addi %c0_i32_45, %c8_i32_46 : i32
    %c1_i32_47 = arith.constant 1 : i32
    %56 = scf.for %arg19 = %c0_i32_45 to %55 step %c1_i32_47 iter_args(%arg20 = %54) -> (vector<8x32xf32>)  : i32 {
      %58 = arith.index_cast %arg19 : i32 to index
      %c0_51 = arith.constant 0 : index
      %c0_52 = arith.constant 0 : index
      %59 = vector.load %arg16[%58, %c0_51, %c0_52] : memref<8x8x1xf32, #tpu.memory_space<vmem>>, vector<1x8x1xf32>
      %60 = vector.shape_cast %59 : vector<1x8x1xf32> to vector<8x1xf32>
      %61 = arith.index_cast %arg19 : i32 to index
      %c0_53 = arith.constant 0 : index
      %c0_54 = arith.constant 0 : index
      %62 = vector.load %arg18[%61, %c0_53, %c0_54] : memref<8x8x32xf32, #tpu.memory_space<vmem>>, vector<1x8x32xf32>
      %63 = vector.shape_cast %62 : vector<1x8x32xf32> to vector<8x32xf32>
      %64 = vector.broadcast %60 : vector<8x1xf32> to vector<8x32xf32>
      %65 = arith.mulf %64, %63 : vector<8x32xf32>
      %66 = arith.addf %arg20, %65 : vector<8x32xf32>
      scf.yield %66 : vector<8x32xf32>
    }
    %c8_i32_48 = arith.constant 8 : i32
    %c0_49 = arith.constant 0 : index
    %c0_50 = arith.constant 0 : index
    %57 = vector.load %arg15[%c0_49, %c0_50] : memref<8x32xf32, #tpu.memory_space<vmem>>, vector<8x32xf32>
    tpu.vector_store %arg15[%c0_49, %c0_50], %56 {strides = array<i32>} : memref<8x32xf32, #tpu.memory_space<vmem>>, vector<8x32xf32>,
    return
  }
  func.func @transform_0(%arg0: i32) -> (i32, i32) {
    %c0_i32 = arith.constant 0 : i32
    %c0_i32_0 = arith.constant 0 : i32
    return %arg0, %c0_i32 : i32, i32
  }
  func.func @transform_1(%arg0: i32) -> (i32, i32, i32) {
    %c0_i32 = arith.constant 0 : i32
    %c0_i32_0 = arith.constant 0 : i32
    %c0_i32_1 = arith.constant 0 : i32
    return %c0_i32, %arg0, %c0_i32_0 : i32, i32, i32
  }
  func.func @transform_2(%arg0: i32) -> (i32, i32) {
    %c0_i32 = arith.constant 0 : i32
    %c0_i32_0 = arith.constant 0 : i32
    %c0_i32_1 = arith.constant 0 : i32
    return %c0_i32, %c0_i32_0 : i32, i32
  }
  func.func @transform_3(%arg0: i32) -> (i32, i32) {
    %c0_i32 = arith.constant 0 : i32
    %c0_i32_0 = arith.constant 0 : i32
    %c0_i32_1 = arith.constant 0 : i32
    return %c0_i32, %c0_i32_0 : i32, i32
  }
  func.func @transform_4(%arg0: i32) -> (i32, i32) {
    %c0_i32 = arith.constant 0 : i32
    %c0_i32_0 = arith.constant 0 : i32
    %c0_i32_1 = arith.constant 0 : i32
    return %c0_i32, %c0_i32_0 : i32, i32
  }
  func.func @transform_5(%arg0: i32) -> (i32, i32) {
    %c0_i32 = arith.constant 0 : i32
    %c0_i32_0 = arith.constant 0 : i32
    %c0_i32_1 = arith.constant 0 : i32
    return %c0_i32, %c0_i32_0 : i32, i32
  }
  func.func @transform_6(%arg0: i32) -> (i32, i32) {
    %c0_i32 = arith.constant 0 : i32
    %c0_i32_0 = arith.constant 0 : i32
    %c0_i32_1 = arith.constant 0 : i32
    return %c0_i32, %c0_i32_0 : i32, i32
  }
  func.func @transform_7(%arg0: i32) -> (i32, i32) {
    %c0_i32 = arith.constant 0 : i32
    %c0_i32_0 = arith.constant 0 : i32
    %c0_i32_1 = arith.constant 0 : i32
    return %c0_i32, %c0_i32_0 : i32, i32
  }
  func.func @transform_8(%arg0: i32) -> (i32, i32) {
    %c0_i32 = arith.constant 0 : i32
    %c0_i32_0 = arith.constant 0 : i32
    %c0_i32_1 = arith.constant 0 : i32
    return %c0_i32, %c0_i32_0 : i32, i32
  }
  func.func @transform_9(%arg0: i32) -> (i32, i32) {
    %c0_i32 = arith.constant 0 : i32
    %c0_i32_0 = arith.constant 0 : i32
    %c0_i32_1 = arith.constant 0 : i32
    return %c0_i32, %c0_i32_0 : i32, i32
  }
  func.func @transform_10(%arg0: i32) -> (i32, i32) {
    %c0_i32 = arith.constant 0 : i32
    %c0_i32_0 = arith.constant 0 : i32
    %c0_i32_1 = arith.constant 0 : i32
    return %c0_i32, %c0_i32_0 : i32, i32
  }
  func.func @transform_11(%arg0: i32) -> (i32, i32) {
    %c0_i32 = arith.constant 0 : i32
    %c0_i32_0 = arith.constant 0 : i32
    %c0_i32_1 = arith.constant 0 : i32
    return %c0_i32, %c0_i32_0 : i32, i32
  }
  func.func @transform_12(%arg0: i32) -> (i32, i32) {
    %c0_i32 = arith.constant 0 : i32
    %c0_i32_0 = arith.constant 0 : i32
    %c0_i32_1 = arith.constant 0 : i32
    return %c0_i32, %c0_i32_0 : i32, i32
  }
  func.func @transform_13(%arg0: i32) -> (i32, i32) {
    %c0_i32 = arith.constant 0 : i32
    %c0_i32_0 = arith.constant 0 : i32
    %c0_i32_1 = arith.constant 0 : i32
    return %c0_i32, %c0_i32_0 : i32, i32
  }
  func.func @transform_14(%arg0: i32) -> (i32, i32) {
    %c0_i32 = arith.constant 0 : i32
    %c0_i32_0 = arith.constant 0 : i32
    return %arg0, %c0_i32 : i32, i32
  }
  func.func @transform_15(%arg0: i32) -> (i32, i32, i32) {
    %c0_i32 = arith.constant 0 : i32
    %c0_i32_0 = arith.constant 0 : i32
    %c0_i32_1 = arith.constant 0 : i32
    return %c0_i32, %arg0, %c0_i32_0 : i32, i32, i32
  }
}

</mosaic_0001>

<bundles_post_ra>
// kernel: tpu_custom_call.1
= control target key start
LH: loop header
LB: loop body
LE: loop exit
PB: predicated region body
PF: predicated region fallthrough
CT: control target
= control target key end

     0   :  { %s1397_s0 = inlined_call_operand.vmem [shape: s32[8,1], index: 0, kind: input, shape index: {}]   ;;  %s1398_s1 = inlined_call_operand.hbm [shape: f32[8,8,8], index: 1, kind: input, shape index: {}]   ;;  %s1399_s2 = inlined_call_operand.vmem [shape: bf16[8,96], index: 2, kind: input, shape index: {}]   ;;  %s1400_s3 = inlined_call_operand.hbm [shape: bf16[32,96], index: 3, kind: input, shape index: {}]   ;;  %s1401_s4 = inlined_call_operand.vmem [shape: f32[1,96], index: 4, kind: input, shape index: {}]   ;;  %s1402_s5 = inlined_call_operand.vmem [shape: f32[1,96], index: 5, kind: input, shape index: {}]   ;;  %s1403_s6 = inlined_call_operand.hbm [shape: bf16[32,96], index: 6, kind: input, shape index: {}]   ;;  %s1404_s7 = inlined_call_operand.hbm [shape: bf16[32,96], index: 7, kind: input, shape index: {}]   ;;  %s1405_s8 = inlined_call_operand.vmem [shape: f32[1,96], index: 8, kind: input, shape index: {}]   ;;  %s1406_s9 = inlined_call_operand.vmem [shape: f32[1,96], index: 9, kind: input, shape index: {}]   ;;  %s1407_s10 = inlined_call_operand.hbm [shape: bf16[32,64], index: 10, kind: input, shape index: {}]   ;;  %s1408_s11 = inlined_call_operand.vmem [shape: f32[1,64], index: 11, kind: input, shape index: {}]   ;;  %s1409_s12 = inlined_call_operand.vmem [shape: f32[1,64], index: 12, kind: input, shape index: {}]   ;;  %s1410_s13 = inlined_call_operand.<no memory space> [shape: f32[1,1], index: 13, kind: input, shape index: {}]   ;;  %s1411_s14 = inlined_call_operand.hbm [shape: f32[8,32], index: 14, kind: output, shape index: {0}]   ;;  %s1412_s15 = inlined_call_operand.vmem [shape: f32[8,8,1], index: 15, kind: output, shape index: {1}]  }
   0x1   :  { %v21_v0 = vstv %s1410_s13 }
   0x2   :  { %22 = vst [vmem:[#allocation4] sm:$0x1] %v21_v0 }
   0x3   :  { %23 = vsyncpa [#allocation6], 0 }
   0x4   :  { %24 = vsyncpa [#allocation9], 0 }
   0x5   :  { %25 = vsyncpa [#allocation12], 0  ;;  %s48_s22 = sshll.u32 %s1400_s3, 4  ;;  %s49_s22 = int_to_ptr.hbm [resolvable:$true] %s48_s22 }
   0x6   :  { %26 = vsyncpa [#allocation7], 0  ;;  %s1082_s23 = smov [#allocation8]   ;;  %s78_s27 = sshll.u32 %s1404_s7, 4  ;;  %s79_s27 = int_to_ptr.hbm [resolvable:$true] %s78_s27 }
   0x7   :  { %s50_s24 = sshll.u32 %s1082_s23, 4  ;;  %s1083_s28 = smov 64   ;;  %s51_s24 = int_to_ptr.vmem [resolvable:$true] %s50_s24 }
   0x8   :  { %s1084_s29 = smov 4   ;;  %s1085_s13 = smov [#allocation11]  }
   0x9   :  { %56 = dma.hbm_to_vmem [thread:$0]  %s49_s22, 256, %s51_s24, [#allocation9], %s1083_s28, %s1083_s28, %s1084_s29  }
   0xa   :  { %s80_s30 = sshll.u32 %s1085_s13, 4  ;;  %s33_s17 = sshll.u32 %s1398_s1, 4  ;;  %s81_s30 = int_to_ptr.vmem [resolvable:$true] %s80_s30  ;;  %s34_s17 = int_to_ptr.hbm [resolvable:$true] %s33_s17 }
   0xb   :  { %86 = dma.hbm_to_vmem [thread:$0]  %s79_s27, 256, %s81_s30, [#allocation12], %s1083_s28, %s1083_s28, %s1084_s29  }
   0xc   :  { %s1086_s7 = smov [#allocation5]   ;;  %s65_s21 = sshll.u32 %s1403_s6, 4  ;;  %s66_s21 = int_to_ptr.hbm [resolvable:$true] %s65_s21 }
   0xd   :  { %s35_s18 = sshll.u32 %s1086_s7, 4  ;;  %s1087_s22 = smov 128   ;;  %s36_s18 = int_to_ptr.vmem [resolvable:$true] %s35_s18 }
   0xe   :  { %s1088_s23 = smov 8   ;;  %s1089_s24 = smov [#allocation10]  }
   0xf   :  { %41 = dma.hbm_to_vmem [thread:$0]  %s34_s17, 1024, %s36_s18, [#allocation6], %s1087_s22, %s1087_s22, %s1088_s23  }
  0x10   :  { %s67_s25 = sshll.u32 %s1089_s24, 4  ;;  %s95_s13 = sshll.u32 %s1407_s10, 4  ;;  %s68_s25 = int_to_ptr.vmem [resolvable:$true] %s67_s25  ;;  %s96_s13 = int_to_ptr.hbm [resolvable:$true] %s95_s13 }
  0x11   :  { %73 = dma.hbm_to_vmem [thread:$0]  %s66_s21, 256, %s68_s25, [#allocation9], %s1083_s28, %s1083_s28, %s1084_s29  }
  0x12   :  { %s1090_s27 = smov [#allocation13]  }
  0x13   :  { %s97_s30 = sshll.u32 %s1090_s27, 4  ;;  %s98_s30 = int_to_ptr.vmem [resolvable:$true] %s97_s30 }
  0x14   :  { %103 = dma.hbm_to_vmem [thread:$0]  %s96_s13, 256, %s98_s30, [#allocation12], %s1083_s28, %s1083_s28, %s1084_s29  }
  0x15   :  { %1054 = dma.done.wait [#allocation6], 1024  }
  0x16   :  { %1055 = vsyncadd [#allocation6], 4294966272 }
  0x17   :  { %1056 = dma.done.wait [#allocation9], 512  }
  0x18   :  { %1057 = vsyncadd [#allocation9], 4294966784 }
  0x19   :  { %1058 = dma.done.wait [#allocation12], 512  }
  0x1a   :  { %1059 = vsyncadd [#allocation12], 4294966784  ;;  %vm161_vm0 = vcmask 1043456   ;;  %v1205_v1 = vld [vmem:[#allocation8] sm:$0xf]  ;;  %v132_v18 = vld [vmem:[#allocation5 + $0x8] sm:$0xff] }
  0x1b   :  { %v1207_v2 = vld [vmem:[#allocation8] sm:$0xf0]  ;;  %v1209_v3 = vld [vmem:[#allocation8 + $0x8] sm:$0xf]  ;;  %v1211_v4 = vld [vmem:[#allocation8 + $0x8] sm:$0xf0] }
  0x1c   :  { %v1216_v5 = vld [vmem:[%s1402_s5] sm:$0x1]  ;;  %v1218_v6 = vld [vmem:[#allocation10] sm:$0xf]  ;;  %v1220_v7 = vld [vmem:[#allocation10] sm:$0xf0] }
  0x1d   :  { %v1222_v8 = vld [vmem:[#allocation10 + $0x8] sm:$0xf]  ;;  %v1224_v9 = vld [vmem:[#allocation10 + $0x8] sm:$0xf0]  ;;  %v1231_v11 = vld [vmem:[#allocation11] sm:$0xf] }
  0x1e   :  { %v1229_v10 = vld [vmem:[%s1405_s8] sm:$0x1]  ;;  %v1233_v12 = vld [vmem:[#allocation11] sm:$0xf0]  ;;  %v1235_v13 = vld [vmem:[#allocation11 + $0x8] sm:$0xf] }
  0x1f   :  { %v1237_v14 = vld [vmem:[#allocation11 + $0x8] sm:$0xf0]  ;;  %v1242_v15 = vld [vmem:[%s1406_s9] sm:$0x1]  ;;  %v131_v17 = vld [vmem:[#allocation5] sm:$0xff]  ;;  %vm148_vm1 = vcmask 64512  }
  0x20   :  { %v143_v16 = vld [vmem:[%s1399_s2] sm:$0xf]  ;;  %v139_v20 = vpack.c.bf16 %v132_v18, %v131_v17  ;;  %v133_v21 = vld [vmem:[#allocation5 + $0x10] sm:$0xff]  ;;  %v136_v25 = vld [vmem:[#allocation5 + $0x28] sm:$0xff]  ;;  %vm194_vm2 = vcmask 785408   ;;  %v1259_v47 = vmov 0.0  }
  0x21   :  { %v163_v19 = vsel %vm161_vm0, %v143_v16, 0  ;;  %v134_v22 = vld [vmem:[#allocation5 + $0x18] sm:$0xff]  ;;  %v135_v23 = vld [vmem:[#allocation5 + $0x20] sm:$0xff]  ;;  %v137_v26 = vld [vmem:[#allocation5 + $0x30] sm:$0xff]  ;;  %v1261_v48 = vmov 0.0  }
  0x22   :  { %172 = vmatpush.bf16.msra.mxu0 %v163_v19  ;;  %777 = vmatpush.bf16.msra.mxu1 %v163_v19  ;;  %v140_v24 = vpack.c.bf16 %v134_v22, %v133_v21  ;;  %v138_v27 = vld [vmem:[#allocation5 + $0x38] sm:$0xff]  ;;  %v141_v28 = vpack.c.bf16 %v136_v25, %v135_v23 }
  0x23   :  { %778 = vmatpush.bf16.msra.mxu2 %v163_v19  ;;  %779 = vmatpush.bf16.msra.mxu3 %v163_v19  ;;  %v142_v29 = vpack.c.bf16 %v138_v27, %v137_v26  ;;  %v839_v30 = vld [vmem:[%s1401_s4] ss:$0 sm:$0xff]  ;;  %s1263_s4 = smov 0  }
  0x25   :  { %722 = vmatmul.msk.bf16.vlgmr.msra.gmra.mxu0 %vm148_vm1, %v139_v20  ;;  %723 = vmatmul.msk.bf16.vlgmr.msra.gmra.mxu1 %vm148_vm1, %v140_v24 }
  0x26   :  { %724 = vmatmul.msk.bf16.vlgmr.msra.gmra.mxu2 %vm148_vm1, %v141_v28  ;;  %725 = vmatmul.msk.bf16.vlgmr.msra.gmra.mxu3 %vm148_vm1, %v142_v29 }
  0xa2   :  { %v174_v31 = vpop.f32.mrf.mxu0  ;;  %v179_v32 = vpop.f32.mrf.mxu1 }
  0xa3   :  { %v175_v33 = vadd.f32 %v839_v30, %v174_v31  ;;  %v180_v34 = vadd.f32 %v839_v30, %v179_v32 }
  0xa5   :  { %195 = vst.msk [vmem:[#allocation2] sm:$0xff] %vm194_vm2, %v175_v33 }
  0xa6   :  { %197 = vst.msk [vmem:[#allocation2 + $0x10] sm:$0xff] %vm194_vm2, %v180_v34 }
  0xa9   :  { %v184_v35 = vpop.f32.mrf.mxu2  ;;  %v189_v36 = vpop.f32.mrf.mxu3 }
  0xaa   :  { %v185_v37 = vadd.f32 %v839_v30, %v184_v35  ;;  %v190_v38 = vadd.f32 %v839_v30, %v189_v36  ;;  %v176_v39 = vpop.f32.mrf.mxu0  ;;  %v181_v40 = vpop.f32.mrf.mxu1 }
  0xab   :  { %v177_v41 = vadd.f32 %v839_v30, %v176_v39  ;;  %v182_v42 = vadd.f32 %v839_v30, %v181_v40 }
  0xac   :  { %199 = vst.msk [vmem:[#allocation2 + $0x20] sm:$0xff] %vm194_vm2, %v185_v37 }
  0xad   :  { %201 = vst.msk [vmem:[#allocation2 + $0x30] sm:$0xff] %vm194_vm2, %v190_v38 }
  0xae   :  { %196 = vst.msk [vmem:[#allocation2 + $0x8] sm:$0xff] %vm194_vm2, %v177_v41 }
  0xaf   :  { %198 = vst.msk [vmem:[#allocation2 + $0x18] sm:$0xff] %vm194_vm2, %v182_v42 }
  0xb1   :  { %v186_v43 = vpop.f32.mrf.mxu2  ;;  %v191_v44 = vpop.f32.mrf.mxu3 }
  0xb2   :  { %v187_v45 = vadd.f32 %v839_v30, %v186_v43  ;;  %v192_v46 = vadd.f32 %v839_v30, %v191_v44 }
  0xb4   :  { %200 = vst.msk [vmem:[#allocation2 + $0x28] sm:$0xff] %vm194_vm2, %v187_v45 }
  0xb5   :  { %202 = vst.msk [vmem:[#allocation2 + $0x38] sm:$0xff] %vm194_vm2, %v192_v46 }
  0xb6 LB: > { %v733_v49 = vor.u32 %v1211_v4, %v1209_v3  ;;  %v226_v50 = vpack.c.bf16 %v1068_v48, %v1068_v48  ;;  %v729_v51 = vor.u32 %v1207_v2, %v1205_v1  ;;  %s1091_s9 = smov 96   ;;  %vm245_vm3 = vcmask 261120   ;;  %s1092_s7 = smov 64   ;;  %s1072_s4 = sphi %s1263_s4, %s223_s4   ;;  %v1068_v48 = vphi %v1261_v48, %v303_v48   ;;  %v1064_v47 = vphi %v1259_v47, %v412_v47  }
  0xb7   : > { %v228_v53 = vperm.slane %v1216_v5, 0  ;;  %s735_s18 = sshll.u32 %s1072_s4, 3  ;;  %v753_v25 = vor.u32 %v1237_v14, %v1235_v13  ;;  %v339_v26 = vpack.c.bf16 %v1064_v47, %v1064_v47  ;;  %v749_v27 = vor.u32 %v1233_v12, %v1231_v11  ;;  %s223_s4 = sadd.s32 1, %s1072_s4  }
  0xb8   : > { %255 = vmatpush.bf16.msra.mxu0 %v733_v49  ;;  %231 = vrot.lane.b32.xlu0 %v226_v50, %s1091_s9  ;;  %s263_s19 = scalar_lea.vmem [#allocation2], %s735_s18  ;;  %v744_v32 = vor.u32 %v1224_v9, %v1222_v8  ;;  %v740_v33 = vor.u32 %v1220_v7, %v1218_v6  ;;  %v341_v39 = vperm.slane %v1242_v15, 0  ;;  %v306_v44 = vperm.slane %v1229_v10, 0  ;;  %s417_s20 = scalar_lea.vmem [#allocation3], %s735_s18 }
  0xb9   : > { %367 = vmatpush.bf16.msra.mxu2 %v753_v25  ;;  %344 = vrot.lane.b32.xlu2 %v339_v26, %s1091_s9  ;;  %p220_p0 = scmp.ge.s32.totalorder %s223_s4, 8  }
  0xba   : > { %332 = vmatpush.bf16.msra.mxu1 %v744_v32  ;;  %v776_v25 = vld [vmem:[#allocation13 + $0x8] sm:$0xff] (%p220_p0)  ;;  %v775_v26 = vld [vmem:[#allocation13] sm:$0xff] (%p220_p0)  ;;  %vm513_vm12 = vcmask (%p220_p0), 523264   ;;  %s1078_s8 = smov (%p220_p0), 0  }
  0xbb   :  { %782 = vmatpush.bf16.msra.mxu3 (%p220_p0), %v776_v25  ;;  %v852_v1 = vld [vmem:[%s1408_s11] ss:$0 sm:$0xff] (%p220_p0) }
  0xbc   : > { %256 = vmatpush.bf16.msra.mxu0 %v729_v51  ;;  %v264_v57 = vld [vmem:[%s263_s19] sm:$0xff] }
  0xbd   : > { %368 = vmatpush.bf16.msra.mxu2 %v749_v27  ;;  %v853_v6 = vld [vmem:[%s1409_s12] ss:$0 sm:$0xff] (%p220_p0) }
  0xbe   : > { %333 = vmatpush.bf16.msra.mxu1 %v740_v33 }
  0xbf   :  { %785 = vmatpush.bf16.msra.mxu3 (%p220_p0), %v775_v26 }
 0x113   : > { %v345_v31 = vpop.permute.xlu2 %344 }
 0x114   : > { %754 = vmatmul.msk.bf16.vlgmr.msra.gmra.mxu2 %vm245_vm3, %v345_v31 }
 0x115   :  { %781 = vmatpush.bf16.msra.mxu2 (%p220_p0), %v776_v25 }
 0x119   :  { %784 = vmatpush.bf16.msra.mxu2 (%p220_p0), %v775_v26 }
 0x12a   : > { %v232_v52 = vpop.permute.xlu0 %231 }
 0x12b   : > { %734 = vmatmul.msk.bf16.vlgmr.msra.gmra.mxu0 %vm245_vm3, %v232_v52 }
 0x12c   :  { %470 = vmatpush.bf16.msra.mxu0 (%p220_p0), %v776_v25 }
 0x130   :  { %471 = vmatpush.bf16.msra.mxu0 (%p220_p0), %v775_v26 }
 0x197   : > { %v370_v40 = vpop.f32.mrf.mxu2 }
 0x198   : > { %v371_v41 = vadd.f32 %v370_v40, %v341_v39 }
 0x19f   : > { %v372_v42 = vpop.f32.mrf.mxu2 }
 0x1a8   : > { %v258_v54 = vpop.f32.mrf.mxu0 }
 0x1a9   : > { %v259_v55 = vadd.f32 %v258_v54, %v228_v53 }
 0x1ab   : > { %286 = vrot.lane.b32.xlu0 %v259_v55, %s1092_s7  ;;  %v265_v58 = vadd.f32 %v264_v57, %v259_v55 }
 0x1ad   : > { %v736_v59 = vmul.f32 -1.442695, %v265_v58 }
 0x1af   : > { %840 = vpow2.f32 %v736_v59 }
 0x1b0   : > { %v260_v56 = vpop.f32.mrf.mxu0 }
 0x1b3   : > { %395 = vrot.lane.b32.xlu0 %v371_v41, %s1092_s7 }
 0x1b5   : > { %v841_v60 = vpop.eup %840 }
 0x1b6   : > { %v269_v61 = vadd.f32 1.0, %v841_v60 }
 0x1b8   : > { %842 = vrcp.f32 %v269_v61  ;;  %v281_v18 = vand.u32 2147483648, %v269_v61  ;;  %vm275_vm5 = vweird.f32 %v269_v61  ;;  %v279_v19 = vand.u32 2147483647, %v269_v61 }
 0x1ba   : > { %v282_v21 = vor.u32 1.1754944e-38, %v281_v18  ;;  %vm280_vm7 = vcmp.eq.f32.partialorder %v279_v19, 8.507059e+37 }
 0x1be   : > { %v843_v62 = vpop.eup %842 }
 0x1bf   : > { %v271_v63 = vmul.f32 %v843_v62, %v269_v61  ;;  %vm276_vm4 = vweird.f32 %v843_v62 }
 0x1c0   : > { %vm277_vm6 = vmor %vm275_vm5, %vm276_vm4  ;;  %vm567_vm4 = vcmask (%p220_p0), 7168  }
 0x1c1   : > { %v272_v0 = vsub.f32 1.0, %v271_v63 }
 0x1c3   : > { %v273_v16 = vmul.f32 %v843_v62, %v272_v0 }
 0x1c5   : > { %v274_v17 = vadd.f32 %v843_v62, %v273_v16 }
 0x1c7   : > { %v278_v20 = vsel %vm277_vm6, %v843_v62, %v274_v17 }
 0x1c8   : > { %v283_v23 = vsel %vm280_vm7, %v282_v21, %v278_v20 }
 0x1c9   : > { %v296_v34 = vsub.f32 1.0, %v283_v23  ;;  %v302_v36 = vmul.f32 %v1068_v48, %v283_v23 }
 0x21d   : > { %v287_v22 = vpop.permute.xlu0 %286 }
 0x21e   : > { %v289_v24 = vmul.f32 %v287_v22, %v283_v23 }
 0x220   : > { %291 = vrot.lane.b32.xlu1 %v289_v24, %s1092_s7 }
 0x225   : > { %v396_v61 = vpop.permute.xlu0 %395 }
 0x292   : > { %v292_v28 = vpop.permute.xlu1 %291 }
 0x293   : > { %v294_v29 = vadd.f32 %v292_v28, %v264_v57 }
 0x295   : > { %844 = vtanh.f32 %v294_v29 }
 0x29b   : > { %v845_v30 = vpop.eup %844 }
 0x29c   : > { %298 = vrot.lane.b32.xlu1 %v845_v30, %s1091_s9 }
 0x30e   : > { %v299_v35 = vpop.permute.xlu1 %298 }
 0x30f   : > { %v301_v37 = vmul.f32 %v299_v35, %v296_v34 }
 0x311   : > { %v303_v48 = vadd.f32 %v302_v36, %v301_v37  }
 0x313   : > { %v304_v38 = vpack.c.bf16 %v303_v48, %v303_v48 }
 0x315   : > { %309 = vrot.lane.b32.xlu2 %v304_v38, %s1091_s9 }
 0x36f   : > { %v310_v43 = vpop.permute.xlu2 %309 }
 0x370   : > { %745 = vmatmul.msk.bf16.vlgmr.msra.gmra.mxu1 %vm245_vm3, %v310_v43 }
 0x371   :  { %780 = vmatpush.bf16.msra.mxu1 (%p220_p0), %v776_v25 }
 0x375   :  { %783 = vmatpush.bf16.msra.mxu1 (%p220_p0), %v775_v26 }
 0x3ed   : > { %v335_v45 = vpop.f32.mrf.mxu1 }
 0x3ee   : > { %v336_v46 = vadd.f32 %v335_v45, %v306_v44 }
 0x3f0   : > { %v374_v49 = vadd.f32 %v371_v41, %v336_v46 }
 0x3f2   : > { %v755_v50 = vmul.f32 -1.442695, %v374_v49 }
 0x3f4   : > { %846 = vpow2.f32 %v755_v50 }
 0x3f5   : > { %v337_v51 = vpop.f32.mrf.mxu1 }
 0x3fa   : > { %v847_v52 = vpop.eup %846 }
 0x3fb   : > { %v378_v53 = vadd.f32 1.0, %v847_v52 }
 0x3fd   : > { %848 = vrcp.f32 %v378_v53  ;;  %v390_v57 = vand.u32 2147483648, %v378_v53  ;;  %v388_v59 = vand.u32 2147483647, %v378_v53  ;;  %vm384_vm9 = vweird.f32 %v378_v53 }
 0x3ff   : > { %v391_v62 = vor.u32 1.1754944e-38, %v390_v57  ;;  %vm389_vm11 = vcmp.eq.f32.partialorder %v388_v59, 8.507059e+37 }
 0x403   : > { %v849_v54 = vpop.eup %848 }
 0x404   : > { %v380_v55 = vmul.f32 %v849_v54, %v378_v53  ;;  %vm385_vm8 = vweird.f32 %v849_v54 }
 0x405   : > { %vm386_vm10 = vmor %vm384_vm9, %vm385_vm8 }
 0x406   : > { %v381_v56 = vsub.f32 1.0, %v380_v55 }
 0x408   : > { %v382_v58 = vmul.f32 %v849_v54, %v381_v56 }
 0x40a   : > { %v383_v60 = vadd.f32 %v849_v54, %v382_v58 }
 0x40c   : > { %v387_v63 = vsel %vm386_vm10, %v849_v54, %v383_v60 }
 0x40d   : > { %v392_v0 = vsel %vm389_vm11, %v391_v62, %v387_v63 }
 0x40e   : > { %v398_v16 = vmul.f32 %v396_v61, %v392_v0  ;;  %v405_v20 = vsub.f32 1.0, %v392_v0  ;;  %v411_v22 = vmul.f32 %v1064_v47, %v392_v0 }
 0x410   : > { %400 = vrot.lane.b32.xlu1 %v398_v16, %s1092_s7 }
 0x482   : > { %v401_v17 = vpop.permute.xlu1 %400 }
 0x483   : > { %v403_v18 = vadd.f32 %v401_v17, %v336_v46 }
 0x485   : > { %850 = vtanh.f32 %v403_v18 }
 0x48b   : > { %v851_v19 = vpop.eup %850 }
 0x48c   : > { %407 = vrot.lane.b32.xlu2 %v851_v19, %s1091_s9 }
 0x4e6   : > { %v408_v21 = vpop.permute.xlu2 %407 }
 0x4e7   : > { %v410_v23 = vmul.f32 %v408_v21, %v405_v20  ;;  %v854_v21 = vld [vmem:[#allocation4] ss:$0 sm:$0xff] (%p220_p0) }
 0x4e9   : > { %v412_v47 = vadd.f32 %v411_v22, %v410_v23   ;;  %v550_v23 = vld [vmem:[%s1397_s0] sm:$0xff] (%p220_p0) }
 0x4ea   :  { %vm555_vm13 = vcmp.gt.s32.totalorder (%p220_p0), %v550_v23, 4  ;;  %vm552_vm14 = vcmp.gt.s32.totalorder (%p220_p0), %v550_v23, 1  ;;  %vm553_vm15 = vcmp.gt.s32.totalorder (%p220_p0), %v550_v23, 2  ;;  %vm556_vm0 = vcmp.gt.s32.totalorder (%p220_p0), %v550_v23, 5 }
 0x4eb   : > { %414 = vrot.lane.b32.xlu0 %v412_v47, %s1091_s9  ;;  %vm551_vm1 = vcmp.gt.s32.totalorder (%p220_p0), %v550_v23, 0  ;;  %vm554_vm2 = vcmp.gt.s32.totalorder (%p220_p0), %v550_v23, 3  ;;  %vm557_vm5 = vcmp.gt.s32.totalorder (%p220_p0), %v550_v23, 6  ;;  %vm558_vm6 = vcmp.gt.s32.totalorder (%p220_p0), %v550_v23, 7 }
 0x55a   :  { %222 = sbr.rel (!%p220_p0) target bundleno = 182 (0xb6), region = 122 }
 0x55d   : > { %v415_v24 = vpop.permute.xlu0 %414 }
 0x55e   : > { %418 = vst.msk [vmem:[%s417_s20] sm:$0xff] %vm245_vm3, %v415_v24 }
 0x565   :  { %v419_v27 = vld [vmem:[#allocation3] sm:$0xff]  ;;  %v420_v28 = vld [vmem:[#allocation3 + $0x8] sm:$0xff]  ;;  %v421_v29 = vld [vmem:[#allocation3 + $0x10] sm:$0xff] }
 0x566   :  { %v422_v30 = vld [vmem:[#allocation3 + $0x18] sm:$0xff]  ;;  %v423_v31 = vld [vmem:[#allocation3 + $0x20] sm:$0xff]  ;;  %v424_v32 = vld [vmem:[#allocation3 + $0x28] sm:$0xff]  ;;  %v427_v35 = vpack.c.bf16 %v420_v28, %v419_v27 }
 0x567   :  { %v425_v33 = vld [vmem:[#allocation3 + $0x30] sm:$0xff]  ;;  %v426_v34 = vld [vmem:[#allocation3 + $0x38] sm:$0xff]  ;;  %v428_v36 = vpack.c.bf16 %v422_v30, %v421_v29  ;;  %v429_v48 = vpack.c.bf16 %v424_v32, %v423_v31 }
 0x568   :  { %v430_v37 = vpack.c.bf16 %v426_v34, %v425_v33  ;;  %764 = vmatmul.msk.bf16.vlgmr.msra.gmra.mxu0 %vm245_vm3, %v427_v35 }
 0x569   :  { %765 = vmatmul.msk.bf16.vlgmr.msra.gmra.mxu1 %vm245_vm3, %v428_v36  ;;  %766 = vmatmul.msk.bf16.vlgmr.msra.gmra.mxu2 %vm245_vm3, %v429_v48 }
 0x56a   :  { %767 = vmatmul.msk.bf16.vlgmr.msra.gmra.mxu3 %vm245_vm3, %v430_v37 }
 0x5e5   :  { %v473_v2 = vpop.f32.mrf.mxu0 }
 0x5e6   :  { %v478_v3 = vpop.f32.mrf.mxu1  ;;  %v474_v4 = vadd.f32 %v852_v1, %v473_v2 }
 0x5e7   :  { %v479_v5 = vadd.f32 %v852_v1, %v478_v3 }
 0x5e8   :  { %855 = vtanh.f32 %v474_v4 }
 0x5e9   :  { %857 = vtanh.f32 %v479_v5 }
 0x5ec   :  { %v483_v7 = vpop.f32.mrf.mxu2 }
 0x5ed   :  { %v488_v8 = vpop.f32.mrf.mxu3  ;;  %v484_v9 = vadd.f32 %v852_v1, %v483_v7  ;;  %v475_v10 = vpop.f32.mrf.mxu0 }
 0x5ee   :  { %v480_v11 = vpop.f32.mrf.mxu1  ;;  %v856_v12 = vpop.eup %855  ;;  %v476_v13 = vadd.f32 %v852_v1, %v475_v10  ;;  %v489_v39 = vadd.f32 %v852_v1, %v488_v8 }
 0x5ef   :  { %v481_v14 = vadd.f32 %v852_v1, %v480_v11  ;;  %v858_v15 = vpop.eup %857  ;;  %859 = vtanh.f32 %v484_v9  ;;  %v505_v47 = vmul.f32 %v856_v12, %v853_v6 }
 0x5f0   :  { %v507_v38 = vmul.f32 %v858_v15, %v853_v6  ;;  %861 = vtanh.f32 %v476_v13 }
 0x5f1   :  { %v514_v40 = vsel %vm513_vm12, %v505_v47, 0.0  ;;  %863 = vtanh.f32 %v481_v14 }
 0x5f2   :  { %v520_v41 = vsel %vm513_vm12, %v507_v38, 0.0  ;;  %515 = vadd.xlane.f32.xlu0 %v514_v40  ;;  %865 = vtanh.f32 %v489_v39 }
 0x5f3   :  { %521 = vadd.xlane.f32.xlu1 %v520_v41 }
 0x5f4   :  { %v485_v42 = vpop.f32.mrf.mxu2 }
 0x5f5   :  { %v490_v43 = vpop.f32.mrf.mxu3  ;;  %v860_v44 = vpop.eup %859  ;;  %v486_v45 = vadd.f32 %v852_v1, %v485_v42 }
 0x5f6   :  { %v491_v46 = vadd.f32 %v852_v1, %v490_v43  ;;  %v509_v49 = vmul.f32 %v860_v44, %v853_v6  ;;  %v862_v50 = vpop.eup %861 }
 0x5f7   :  { %867 = vtanh.f32 %v486_v45  ;;  %v864_v51 = vpop.eup %863  ;;  %v506_v53 = vmul.f32 %v862_v50, %v853_v6 }
 0x5f8   :  { %869 = vtanh.f32 %v491_v46  ;;  %v526_v52 = vsel %vm513_vm12, %v509_v49, 0.0  ;;  %v508_v54 = vmul.f32 %v864_v51, %v853_v6  ;;  %v866_v56 = vpop.eup %865 }
 0x5f9   :  { %527 = vadd.xlane.f32.xlu2 %v526_v52  ;;  %v517_v55 = vsel %vm513_vm12, %v506_v53, 0.0  ;;  %v511_v61 = vmul.f32 %v866_v56, %v853_v6 }
 0x5fa   :  { %v523_v57 = vsel %vm513_vm12, %v508_v54, 0.0  ;;  %518 = vadd.xlane.f32.xlu0 %v517_v55 }
 0x5fb   :  { %524 = vadd.xlane.f32.xlu1 %v523_v57  ;;  %v532_v0 = vsel %vm513_vm12, %v511_v61, 0.0 }
 0x5fd   :  { %v868_v58 = vpop.eup %867 }
 0x5fe   :  { %v870_v59 = vpop.eup %869  ;;  %v510_v60 = vmul.f32 %v868_v58, %v853_v6 }
 0x5ff   :  { %v512_v62 = vmul.f32 %v870_v59, %v853_v6 }
 0x600   :  { %v529_v63 = vsel %vm513_vm12, %v510_v60, 0.0 }
 0x601   :  { %530 = vadd.xlane.f32.xlu2 %v529_v63  ;;  %v535_v16 = vsel %vm513_vm12, %v512_v62, 0.0 }
 0x602   :  { %533 = vadd.xlane.f32.xlu0 %v532_v0 }
 0x603   :  { %536 = vadd.xlane.f32.xlu1 %v535_v16 }
 0x665   :  { %v516_v17 = vpop.xlane.xlu0 %515 }
 0x666   :  { %v522_v18 = vpop.xlane.xlu1 %521  ;;  %v542_v27 = vadd.f32 %v854_v21, %v516_v17 }
 0x667   :  { %v544_v26 = vadd.f32 %v854_v21, %v522_v18 }
 0x668   :  { %v559_v37 = vsel %vm551_vm1, %v542_v27, -1e+10 }
 0x669   :  { %v561_v34 = vsel %vm553_vm15, %v544_v26, -1e+10  ;;  %v568_v11 = vsel %vm567_vm4, %v559_v37, -inf }
 0x66a   :  { %v570_v7 = vsel %vm567_vm4, %v561_v34, -inf }
 0x66c   :  { %v528_v19 = vpop.xlane.xlu2 %527 }
 0x66d   :  { %v519_v20 = vpop.xlane.xlu0 %518  ;;  %v546_v24 = vadd.f32 %v854_v21, %v528_v19 }
 0x66e   :  { %v525_v22 = vpop.xlane.xlu1 %524  ;;  %v543_v25 = vadd.f32 %v854_v21, %v519_v20 }
 0x66f   :  { %v545_v28 = vadd.f32 %v854_v21, %v525_v22  ;;  %v563_v31 = vsel %vm555_vm13, %v546_v24, -1e+10 }
 0x670   :  { %v560_v32 = vsel %vm552_vm14, %v543_v25, -1e+10  ;;  %v572_v4 = vsel %vm567_vm4, %v563_v31, -inf }
 0x671   :  { %v562_v1 = vsel %vm554_vm2, %v545_v28, -1e+10  ;;  %v569_v5 = vsel %vm567_vm4, %v560_v32, -inf  ;;  %v573_v15 = vmax.f32 %v568_v11, %v572_v4 }
 0x672   :  { %v571_v12 = vsel %vm567_vm4, %v562_v1, -inf }
 0x674   :  { %v531_v29 = vpop.xlane.xlu2 %530 }
 0x675   :  { %v547_v30 = vadd.f32 %v854_v21, %v531_v29  ;;  %v534_v33 = vpop.xlane.xlu0 %533 }
 0x676   :  { %v537_v36 = vpop.xlane.xlu1 %536  ;;  %v548_v48 = vadd.f32 %v854_v21, %v534_v33 }
 0x677   :  { %v564_v35 = vsel %vm556_vm0, %v547_v30, -1e+10  ;;  %v549_v3 = vadd.f32 %v854_v21, %v537_v36 }
 0x678   :  { %v574_v2 = vsel %vm567_vm4, %v564_v35, -inf  ;;  %v565_v6 = vsel %vm557_vm5, %v548_v48, -1e+10 }
 0x679   :  { %v575_v8 = vmax.f32 %v569_v5, %v574_v2  ;;  %v566_v9 = vsel %vm558_vm6, %v549_v3, -1e+10  ;;  %v576_v10 = vsel %vm567_vm4, %v565_v6, -inf }
 0x67a   :  { %v578_v13 = vsel %vm567_vm4, %v566_v9, -inf  ;;  %v577_v14 = vmax.f32 %v570_v7, %v576_v10 }
 0x67b   :  { %v579_v47 = vmax.f32 %v571_v12, %v578_v13  ;;  %v580_v38 = vmax.f32 %v573_v15, %v575_v8  ;;  %v1074_v13 = vmov 0.0  }
 0x67d   :  { %v581_v39 = vmax.f32 %v577_v14, %v579_v47 }
 0x67f   :  { %v582_v40 = vmax.f32 %v580_v38, %v581_v39 }
 0x681   :  { %v583_v41 = vsub.f32 %v559_v37, %v582_v40  ;;  %v584_v42 = vsub.f32 %v560_v32, %v582_v40  ;;  %v585_v43 = vsub.f32 %v561_v34, %v582_v40  ;;  %v586_v44 = vsub.f32 %v562_v1, %v582_v40 }
 0x682   :  { %v587_v45 = vsub.f32 %v563_v31, %v582_v40  ;;  %v588_v51 = vsub.f32 %v564_v35, %v582_v40  ;;  %v589_v53 = vsub.f32 %v565_v6, %v582_v40  ;;  %v590_v55 = vsub.f32 %v566_v9, %v582_v40 }
 0x683   :  { %v591_v46 = vmul.f32 1.442695, %v583_v41  ;;  %v593_v49 = vmul.f32 1.442695, %v584_v42  ;;  %v595_v50 = vmul.f32 1.442695, %v585_v43 }
 0x684   :  { %v597_v52 = vmul.f32 1.442695, %v586_v44  ;;  %v599_v54 = vmul.f32 1.442695, %v587_v45  ;;  %v601_v56 = vmul.f32 1.442695, %v588_v51 }
 0x685   :  { %871 = vpow2.f32 %v591_v46  ;;  %v603_v57 = vmul.f32 1.442695, %v589_v53  ;;  %v605_v60 = vmul.f32 1.442695, %v590_v55 }
 0x686   :  { %873 = vpow2.f32 %v593_v49 }
 0x687   :  { %875 = vpow2.f32 %v595_v50 }
 0x688   :  { %877 = vpow2.f32 %v597_v52 }
 0x689   :  { %879 = vpow2.f32 %v599_v54 }
 0x68a   :  { %881 = vpow2.f32 %v601_v56 }
 0x68b   :  { %v872_v58 = vpop.eup %871  ;;  %883 = vpow2.f32 %v603_v57 }
 0x68c   :  { %v874_v59 = vpop.eup %873  ;;  %v607_v61 = vsel %vm567_vm4, %v872_v58, 0.0  ;;  %885 = vpow2.f32 %v605_v60 }
 0x68d   :  { %v876_v62 = vpop.eup %875  ;;  %v608_v63 = vsel %vm567_vm4, %v874_v59, 0.0 }
 0x68e   :  { %v878_v0 = vpop.eup %877  ;;  %v609_v16 = vadd.f32 %v608_v63, %v607_v61  ;;  %v610_v17 = vsel %vm567_vm4, %v876_v62, 0.0 }
 0x68f   :  { %v880_v18 = vpop.eup %879  ;;  %v612_v20 = vsel %vm567_vm4, %v878_v0, 0.0 }
 0x690   :  { %v611_v19 = vadd.f32 %v610_v17, %v609_v16  ;;  %v882_v21 = vpop.eup %881  ;;  %v614_v23 = vsel %vm567_vm4, %v880_v18, 0.0 }
 0x691   :  { %v884_v24 = vpop.eup %883  ;;  %v616_v26 = vsel %vm567_vm4, %v882_v21, 0.0 }
 0x692   :  { %v613_v22 = vadd.f32 %v612_v20, %v611_v19  ;;  %v886_v27 = vpop.eup %885  ;;  %v618_v29 = vsel %vm567_vm4, %v884_v24, 0.0 }
 0x693   :  { %v620_v31 = vsel %vm567_vm4, %v886_v27, 0.0 }
 0x694   :  { %v615_v25 = vadd.f32 %v614_v23, %v613_v22 }
 0x696   :  { %v617_v28 = vadd.f32 %v616_v26, %v615_v25 }
 0x698   :  { %v619_v30 = vadd.f32 %v618_v29, %v617_v28 }
 0x69a   :  { %v621_v32 = vadd.f32 %v620_v31, %v619_v30 }
 0x69c   :  { %887 = vrcp.f32 %v621_v32  ;;  %v633_v36 = vand.u32 2147483648, %v621_v32  ;;  %v631_v37 = vand.u32 2147483647, %v621_v32  ;;  %vm627_vm8 = vweird.f32 %v621_v32 }
 0x69e   :  { %v634_v2 = vor.u32 1.1754944e-38, %v633_v36  ;;  %vm632_vm10 = vcmp.eq.f32.partialorder %v631_v37, 8.507059e+37 }
 0x6a2   :  { %v888_v33 = vpop.eup %887 }
 0x6a3   :  { %v623_v34 = vmul.f32 %v888_v33, %v621_v32  ;;  %vm628_vm7 = vweird.f32 %v888_v33 }
 0x6a4   :  { %vm629_vm9 = vmor %vm627_vm8, %vm628_vm7 }
 0x6a5   :  { %v624_v35 = vsub.f32 1.0, %v623_v34 }
 0x6a7   :  { %v625_v48 = vmul.f32 %v888_v33, %v624_v35 }
 0x6a9   :  { %v626_v1 = vadd.f32 %v888_v33, %v625_v48 }
 0x6ab   :  { %v630_v3 = vsel %vm629_vm9, %v888_v33, %v626_v1 }
 0x6ac   :  { %v635_v4 = vsel %vm632_vm10, %v634_v2, %v630_v3 }
 0x6ad   :  { %v636_v5 = vmul.f32 %v872_v58, %v635_v4  ;;  %v637_v6 = vmul.f32 %v874_v59, %v635_v4  ;;  %v638_v7 = vmul.f32 %v876_v62, %v635_v4  ;;  %v639_v8 = vmul.f32 %v878_v0, %v635_v4 }
 0x6ae   :  { %v640_v9 = vmul.f32 %v880_v18, %v635_v4  ;;  %v641_v10 = vmul.f32 %v882_v21, %v635_v4  ;;  %v642_v11 = vmul.f32 %v884_v24, %v635_v4  ;;  %v643_v12 = vmul.f32 %v886_v27, %v635_v4 }
 0x6af   :  { %644 = vst.msk [vmem:[%s1412_s15] sm:$0xff] %vm567_vm4, %v636_v5 }
 0x6b0   :  { %645 = vst.msk [vmem:[%s1412_s15 + $0x8] sm:$0xff] %vm567_vm4, %v637_v6 }
 0x6b1   :  { %646 = vst.msk [vmem:[%s1412_s15 + $0x10] sm:$0xff] %vm567_vm4, %v638_v7 }
 0x6b2   :  { %647 = vst.msk [vmem:[%s1412_s15 + $0x18] sm:$0xff] %vm567_vm4, %v639_v8 }
 0x6b3   :  { %648 = vst.msk [vmem:[%s1412_s15 + $0x20] sm:$0xff] %vm567_vm4, %v640_v9 }
 0x6b4   :  { %649 = vst.msk [vmem:[%s1412_s15 + $0x28] sm:$0xff] %vm567_vm4, %v641_v10 }
 0x6b5   :  { %650 = vst.msk [vmem:[%s1412_s15 + $0x30] sm:$0xff] %vm567_vm4, %v642_v11 }
 0x6b6   :  { %651 = vst.msk [vmem:[%s1412_s15 + $0x38] sm:$0xff] %vm567_vm4, %v643_v12 }
 0x6b7 LB: > { %v1093_v14 = vmov 0   ;;  %s768_s4 = sshll.u32 %s1080_s8, 3  ;;  %s657_s8 = sadd.s32 1, %s1080_s8   ;;  %s1080_s8 = sphi %s1078_s8, %s657_s8   ;;  %v1076_v13 = vphi %v1074_v13, %v1075_v13  }
 0x6b8   : > { %889 = vset.pattern.permute.xlu0 %v1093_v14  ;;  %s660_s18 = scalar_lea.vmem %s1412_s15, %s768_s4  ;;  %s662_s19 = scalar_lea.vmem [#allocation3], %s768_s4 }
 0x6b9   : > { %v663_v47 = vld [vmem:[%s662_s19] sm:$0xff]  ;;  %p654_p1 = scmp.ge.s32.totalorder %s657_s8, 8  }
 0x6ba   :  { %s679_s22 = sshll.u32 (%p654_p1), %s1411_s14, 4  ;;  %s1094_s23 = smov (%p654_p1), [#allocation14]   ;;  %s680_s22 = int_to_ptr.hbm [resolvable:$true] %s679_s22 }
 0x6bb   :  { %s677_s24 = sshll.u32 (%p654_p1), %s1094_s23, 4  ;;  %s678_s24 = int_to_ptr.vmem [resolvable:$true] %s677_s24 }
 0x6bd   : > { %v661_v15 = vld [vmem:[%s660_s18] sm:$0xff] }
 0x6be   : > { %666 = vperm.xlu0 %889, %v661_v15  }
 0x730   : > { %v667_v38 = vpop.permute.xlu0 %666 }
 0x731   : > { %v669_v39 = vmul.f32 %v667_v38, %v663_v47  ;;  %656 = sbr.rel (!%p654_p1) target bundleno = 1719 (0x6b7), region = 133 }
 0x733   : > { %v670_v40 = vadd.f32 %v1076_v13, %v669_v39  }
 0x735   : > { %v1075_v13 = vmov %v670_v40   ;;  %671 = vst.msk [vmem:[#allocation14] sm:$0xff] (%p654_p1), %vm245_vm3, %v670_v40 }
 0x736   :  { %682 = dma.vmem_to_hbm [thread:$0]  %s678_s24, 128, %s680_s22, [#allocation7]  }
 0x737   :  { %1060 = dma.done.wait [#allocation7], 128  }
 0x738   :  { %1061 = vsyncadd [#allocation7], 4294967168 }
 0x739   :  { %691 = vsyncpa [#allocation6], 1 }
 0x73a   :  { %692 = vsyncpa [#allocation9], 1 }
 0x73b   :  { %693 = vsyncpa [#allocation12], 1 }
 0x73c   :  { %694 = vsyncpa [#allocation7], 1 }

</bundles_post_ra>
